<compile_context>
chip_gen: v6e
topology: v6e:2x2x1
jax: 0.10.0
libtpu: 0.0.40
codegen_flags: <defaults>
</compile_context>

<pallas_src>
import jax
import jax.numpy as jnp
from jax.experimental import pallas as pl
from jax.experimental.pallas import tpu as pltpu


_PER_BUFFER_BYTES = 4 * 1024 * 1024      # auto path: ~4 MiB x tile (8 MiB double-buffered)
_USER_TILE_CAP_BYTES = 8 * 1024 * 1024   # cap for hand-picked tiles (16 MiB double-buffered)
_MEGACORE_MIN_BYTES = 2 * 1024 * 1024    # only force >=2 grid steps when x is at least this big
_VMEM_LIMIT_BYTES = 32 * 1024 * 1024     # safe explicit scoped-VMEM limit on v5e/v6e/v7x


def _round8(n):
    """Round up to a multiple of 8 (min 8) — second-to-last block dim requirement."""
    return max(8, ((int(n) + 7) // 8) * 8)


def _logreg_kernel(x_ref, w_ref, b_ref, o_ref):
    # x_ref: (TB, D)    VMEM streamed batch tile (native dtype)
    # w_ref: (1, D)     VMEM resident weight row (constant index_map)
    # b_ref: (1,)       SMEM scalar bias
    # o_ref: (1, 1, TB) VMEM lane-dense output row for this tile
    x = x_ref[...]
    w = w_ref[...]
    # VPU multiply in the native dtype (bf16-native on v6e/v7x; Mosaic inserts
    # casts on v5e), f32 accumulation in the XLU cross-lane reduce.
    z = jnp.sum(x * w, axis=-1, dtype=jnp.float32)          # (TB,)
    z = z + b_ref[0]                                        # scalar bias from SMEM
    # sigmoid: exp rides the otherwise-idle EUP slot; the divide is a few VALU
    # ops that are free filler under the x DMA.
    y = 1.0 / (1.0 + jnp.exp(-z))
    # Lane-dense store: one full (1, 1, TB) row per grid step instead of TB/8
    # masked single-lane partial stores for a (TB, 1) column.
    o_ref[...] = y.reshape(1, 1, -1).astype(o_ref.dtype)


def _auto_batch_tile(batch, feat, itemsize):
    """Largest batch tile (multiple of 8) with an x buffer of ~4 MiB. No row cap."""
    tb = max(8, (_PER_BUFFER_BYTES // (feat * itemsize)) // 8 * 8)
    return min(tb, _round8(batch))


def logistic_regression_forward(x, weight, bias, *, batch_tile=None):
    """sigmoid(x @ weight.T + bias), i.e. nn.Linear(inputSize, 1) + sigmoid.

    x:      (B, D) float32 or bfloat16 (accumulation is always f32)
    weight: (1, D) -- same layout as nn.Linear.weight
    bias:   (1,)   -- same layout as nn.Linear.bias
    returns (B, 1) float32
    """
    B, D = x.shape
    itemsize = jnp.dtype(x.dtype).itemsize
    w_row = jnp.asarray(weight).reshape(1, D).astype(x.dtype)   # multiply in native dtype
    b_s = jnp.asarray(bias, jnp.float32).reshape(1)

    # Guard the single-tile-in-D assumption: two minimal (8, D) x buffers plus
    # the 8-sublane-padded weight row must fit scoped VMEM.
    min_footprint = (2 * 8 + 8) * D * itemsize
    if min_footprint > _VMEM_LIMIT_BYTES // 2:
        # TODO(synk): tile D with an in-kernel partial-sum accumulator for very large feature dims.
        raise NotImplementedError(
            f"inputSize={D} too large for a single-D-tile kernel; D-tiling not implemented."
        )

    total_bytes = B * D * itemsize
    if batch_tile is not None:
        # Respect the user's tile but clamp it against the VMEM byte budget so a
        # tile tuned on v5e/v6e (128 MiB VMEM) cannot blow past v7x's 64 MiB.
        cap = max(8, (_USER_TILE_CAP_BYTES // (D * itemsize)) // 8 * 8)
        tb = min(_round8(batch_tile), cap, _round8(B))
    else:
        tb = _auto_batch_tile(B, D, itemsize)
        if total_bytes >= _MEGACORE_MIN_BYTES:
            # Ensure at least 2 grid steps so both v7x TensorCores get work ...
            tb = min(tb, _round8(pl.cdiv(_round8(B), 2)))
            n = pl.cdiv(B, tb)
            # ... and prefer an even number of steps to balance the two cores.
            if n > 1 and n % 2 == 1:
                tb = _round8(pl.cdiv(B, n + 1))

    n_tiles = pl.cdiv(B, tb)
    b_pad = n_tiles * tb
    x_p = x if b_pad == B else jnp.pad(x, ((0, b_pad - B), (0, 0)))

    out = pl.pallas_call(
        _logreg_kernel,
        out_shape=jax.ShapeDtypeStruct((n_tiles, 1, tb), jnp.float32),
        grid_spec=pltpu.PrefetchScalarGridSpec(
            num_scalar_prefetch=0,
            grid=(n_tiles,),
            in_specs=[
                pl.BlockSpec((tb, D), lambda i: (i, 0)),            # streamed x tiles
                pl.BlockSpec((1, D), lambda i: (0, 0)),             # weight row (resident)
                pl.BlockSpec(memory_space=pltpu.MemorySpace.SMEM),  # scalar bias
            ],
            # lane-dense output: one (1, 1, TB) row per grid step
            out_specs=pl.BlockSpec((1, 1, tb), lambda i: (i, 0, 0)),
        ),
        compiler_params=pltpu.CompilerParams(
            # batch tiles are independent -> shard across TensorCores (v7x megacore)
            dimension_semantics=("parallel",),
            vmem_limit_bytes=_VMEM_LIMIT_BYTES,
        ),
    )(x_p, w_row, b_s)
    return out.reshape(b_pad, 1)[:B]


if __name__ == "__main__":
    key = jax.random.PRNGKey(0)
    kx, kw, kb, kx2, kx3 = jax.random.split(key, 5)

    # Shapes consistent with logisticRegression(inputSize=32).
    batch, input_size = 12, 32
    x = jax.random.normal(kx, (batch, input_size), dtype=jnp.float32)

    # nn.Linear default init: U(-1/sqrt(fan_in), 1/sqrt(fan_in))
    bound = 1.0 / (input_size ** 0.5)
    weight = jax.random.uniform(
        kw, (1, input_size), minval=-bound, maxval=bound, dtype=jnp.float32
    )
    bias = jax.random.uniform(
        kb, (1,), minval=-bound, maxval=bound, dtype=jnp.float32
    )

    def ref_fn(xx):
        return 1.0 / (1.0 + jnp.exp(-(xx @ weight.T + bias)))

    # 1) Tiny batch: single-tile path (12 rows padded to 16 inside the wrapper).
    out = jax.block_until_ready(logistic_regression_forward(x, weight, bias))
    assert out.shape == (batch, 1)
    assert jnp.allclose(out, ref_fn(x), atol=1e-6, rtol=1e-6)

    # 2) Ragged batch with a user tile: multi-step pipelined path (3 grid steps),
    #    also exercises the user-tile VMEM clamp.
    batch2 = 300
    x2 = jax.random.normal(kx2, (batch2, input_size), dtype=jnp.float32)
    out2 = jax.block_until_ready(
        logistic_regression_forward(x2, weight, bias, batch_tile=128)
    )
    assert out2.shape == (batch2, 1)
    assert jnp.allclose(out2, ref_fn(x2), atol=1e-6, rtol=1e-6)

    # 3) Larger auto-tiled batch: exercises the byte-budget tile picker and the
    #    lane-dense (1, 1, TB) store at a non-trivial tile width.
    batch3 = 4096
    x3 = jax.random.normal(kx3, (batch3, input_size), dtype=jnp.float32)
    out3 = jax.block_until_ready(logistic_regression_forward(x3, weight, bias))
    assert out3.shape == (batch3, 1)
    assert jnp.allclose(out3, ref_fn(x3), atol=1e-6, rtol=1e-6)

    print("KERNEL_OK")
</pallas_src>

<mosaic_0001>
module attributes {stable_mosaic.version = 11 : i64} {
  func.func @_logreg_kernel(%arg0: i32, %arg1: memref<16x32xf32, #tpu.memory_space<vmem>>, %arg2: memref<1x32xf32, #tpu.memory_space<vmem>>, %arg3: memref<1xf32, #tpu.memory_space<smem>>, %arg4: memref<1x1x16xf32, #tpu.memory_space<vmem>>) attributes {dimension_semantics = [#tpu.dimension_semantics<parallel>], iteration_bounds = array<i64: 1>, scalar_prefetch = 0 : i64, scratch_operands = 0 : i64, tpu.core_type = #tpu.core_type<tc>, window_params = [{transform_indices = @transform_0, window_bounds = array<i64: 16, 32>}, {pipeline_mode = #tpu.pipeline_mode<synchronous>, transform_indices = @transform_1, window_bounds = array<i64: 1, 32>}, {transform_indices = @transform_2, window_bounds = array<i64: 1>}, {transform_indices = @transform_3, window_bounds = array<i64: 1, 1, 16>}]} {
    %c0 = arith.constant 0 : index
    %c0_0 = arith.constant 0 : index
    %0 = vector.load %arg1[%c0, %c0_0] : memref<16x32xf32, #tpu.memory_space<vmem>>, vector<16x32xf32>
    %c0_1 = arith.constant 0 : index
    %c0_2 = arith.constant 0 : index
    %1 = vector.load %arg2[%c0_1, %c0_2] : memref<1x32xf32, #tpu.memory_space<vmem>>, vector<1x32xf32>
    %2 = vector.broadcast %1 : vector<1x32xf32> to vector<16x32xf32>
    %3 = arith.mulf %0, %2 : vector<16x32xf32>
    %cst = arith.constant dense<0.000000e+00> : vector<16xf32>
    %4 = vector.multi_reduction <add>, %3, %cst [1] : vector<16x32xf32> to vector<16xf32>
    %c0_3 = arith.constant 0 : index
    %5 = memref.load %arg3[%c0_3] : memref<1xf32, #tpu.memory_space<smem>>
    %6 = vector.broadcast %5 : f32 to vector<16xf32>
    %7 = arith.addf %4, %6 : vector<16xf32>
    %cst_4 = arith.constant 0.000000e+00 : f32
    %8 = vector.broadcast %cst_4 : f32 to vector<16xf32>
    %9 = arith.subf %8, %7 : vector<16xf32>
    %10 = math.exp %9 : vector<16xf32>
    %cst_5 = arith.constant 1.000000e+00 : f32
    %11 = vector.broadcast %cst_5 : f32 to vector<16xf32>
    %12 = arith.addf %11, %10 : vector<16xf32>
    %cst_6 = arith.constant 1.000000e+00 : f32
    %13 = vector.broadcast %cst_6 : f32 to vector<16xf32>
    %14 = arith.divf %13, %12 : vector<16xf32>
    %15 = vector.shape_cast %14 : vector<16xf32> to vector<1x1x16xf32>
    %c0_7 = arith.constant 0 : index
    %c0_8 = arith.constant 0 : index
    %c0_9 = arith.constant 0 : index
    %16 = vector.load %arg4[%c0_7, %c0_8, %c0_9] : memref<1x1x16xf32, #tpu.memory_space<vmem>>, vector<1x1x16xf32>
    tpu.vector_store %arg4[%c0_7, %c0_8, %c0_9], %15 {strides = array<i32>} : memref<1x1x16xf32, #tpu.memory_space<vmem>>, vector<1x1x16xf32>,
    return
  }
  func.func @transform_0(%arg0: i32) -> (i32, i32) {
    %c0_i32 = arith.constant 0 : i32
    %c0_i32_0 = arith.constant 0 : i32
    return %arg0, %c0_i32 : i32, i32
  }
  func.func @transform_1(%arg0: i32) -> (i32, i32) {
    %c0_i32 = arith.constant 0 : i32
    %c0_i32_0 = arith.constant 0 : i32
    %c0_i32_1 = arith.constant 0 : i32
    return %c0_i32, %c0_i32_0 : i32, i32
  }
  func.func @transform_2(%arg0: i32) -> i32 {
    %c0_i32 = arith.constant 0 : i32
    %c0_i32_0 = arith.constant 0 : i32
    return %c0_i32 : i32
  }
  func.func @transform_3(%arg0: i32) -> (i32, i32, i32) {
    %c0_i32 = arith.constant 0 : i32
    %c0_i32_0 = arith.constant 0 : i32
    %c0_i32_1 = arith.constant 0 : i32
    return %arg0, %c0_i32, %c0_i32_0 : i32, i32, i32
  }
}

</mosaic_0001>

<bundles_post_ra>
// kernel: tpu_custom_call.1
= control target key start
LH: loop header
LB: loop body
LE: loop exit
PB: predicated region body
PF: predicated region fallthrough
CT: control target
= control target key end

     0   :  { %9 = vsyncpa [#allocation4], 0  ;;  %s190_s0 = inlined_call_operand.hbm [shape: f32[16,32], index: 0, kind: input, shape index: {}]   ;;  %s191_s1 = inlined_call_operand.vmem [shape: f32[1,32], index: 1, kind: input, shape index: {}]   ;;  %s192_s2 = inlined_call_operand.<no memory space> [shape: f32[1], index: 2, kind: input, shape index: {}]   ;;  %s193_s3 = inlined_call_operand.hbm [shape: f32[1,1,16], index: 3, kind: output, shape index: {}]  }
   0x1   :  { %10 = vsyncpa [#allocation5], 0  ;;  %s154_s12 = smov [#allocation3]  }
   0x2   :  { %s16_s13 = sshll.u32 %s154_s12, 4  ;;  %s17_s13 = int_to_ptr.vmem [resolvable:$true] %s16_s13 }
   0x3   :  { %s118_s14 = scalar_lea.vmem %s17_s13, 256  ;;  %p123_p1 = scmp.lt.s32.totalorder %s17_s13, %s17_s13 }
   0x4   :  { %p119_p0 = scmp.ne.s32.totalorder %s17_s13, %s118_s14  ;;  %p124_p2 = scmp.lt.s32.totalorder %s118_s14, %s118_s14 }
   0x6   :  { %p125_p3 = por %p124_p2, %p123_p1 }
   0x8   :  { %p126_p4 = pnand %p125_p3, %p119_p0 }
   0xa   :  { %129 = shalt.err (!%p126_p4)
}
   0xb   :  { %s155_s15 = smov 128   ;;  %s156_s16 = smov 8  }
   0xc   :  { %22 = dma.hbm_to_vmem [thread:$0]  %s190_s0, 256, %s17_s13, [#allocation4], %s155_s15, %s155_s15, %s156_s16  }
   0xd   :  { %150 = dma.done.wait [#allocation4], 256  }
   0xe   :  { %151 = vsyncadd [#allocation4], 4294967040  ;;  %v30_v0 = vld [vmem:[#allocation3] sm:$0xff]  ;;  %vm41_vm0 = vcmask 261120   ;;  %v31_v2 = vld [vmem:[#allocation3 + $0x8] sm:$0xff]  ;;  %v49_v7 = vstv %s192_s2  ;;  %v66_v20 = vlaneseq  ;;  %s157_s0 = smov [#allocation6]  }
   0xf   :  { %v97_v1 = vld [vmem:[%s191_s1] ss:$0 sm:$0xff]  ;;  %s88_s1 = sshll.u32 %s157_s0, 4  ;;  %vm77_vm1 = vcmask 130112   ;;  %vm80_vm2 = vcmask 122880   ;;  %s89_s1 = int_to_ptr.vmem [resolvable:$true] %s88_s1 }
  0x10   :  { %v39_v3 = vmul.f32 %v97_v1, %v30_v0  ;;  %v40_v4 = vmul.f32 %v97_v1, %v31_v2  ;;  %v67_v21 = vand.u32 127, %v66_v20  ;;  %v69_v22 = vshrl.u32 %v66_v20, 7  ;;  %s130_s2 = scalar_lea.vmem %s89_s1, 16  ;;  %s134_s23 = scalar_lea.vmem %s89_s1, 32 }
  0x11   :  { %p131_p5 = scmp.ne.s32.totalorder %s89_s1, %s130_s2  ;;  %p135_p6 = scmp.lt.s32.totalorder %s89_s1, %s89_s1 }
  0x12   :  { %v42_v5 = vsel %vm41_vm0, %v39_v3, 0.0  ;;  %v45_v6 = vsel %vm41_vm0, %v40_v4, 0.0  ;;  %v72_v23 = vadd.s32 4294967288, %v67_v21  ;;  %v70_v24 = vsub.s32 %v67_v21, %v69_v22  ;;  %p136_p7 = scmp.lt.s32.totalorder %s134_s23, %s130_s2 }
  0x13   :  { %43 = vadd.xlane.f32.xlu0 %v42_v5 }
  0x14   :  { %v75_v25 = vsub.s32 %v72_v23, %v69_v22  ;;  %p137_p8 = por %p136_p7, %p135_p6 }
  0x16   :  { %p138_p9 = pnand %p137_p8, %p131_p5 }
  0x17   :  { %46 = vadd.xlane.f32.xlu0 %v45_v6 }
  0x9c   :  { %v44_v8 = vpop.xlane.xlu0 %43 }
  0x9d   :  { %v50_v9 = vadd.f32 %v49_v7, %v44_v8 }
  0x9f   :  { %v52_v10 = vsub.f32 0.0, %v50_v9 }
  0xa0   :  { %v47_v11 = vpop.xlane.xlu0 %46 }
  0xa1   :  { %v54_v12 = vmul.f32 1.442695, %v52_v10  ;;  %v51_v13 = vadd.f32 %v49_v7, %v47_v11 }
  0xa3   :  { %102 = vpow2.f32 %v54_v12  ;;  %v53_v14 = vsub.f32 0.0, %v51_v13 }
  0xa5   :  { %v56_v15 = vmul.f32 1.442695, %v53_v14 }
  0xa7   :  { %104 = vpow2.f32 %v56_v15 }
  0xb0   :  { %v103_v16 = vpop.eup %102 }
  0xb1   :  { %v58_v17 = vadd.f32 1.0, %v103_v16 }
  0xb3   :  { %106 = vrcp.f32 %v58_v17 }
  0xb4   :  { %v105_v18 = vpop.eup %104 }
  0xb5   :  { %v59_v19 = vadd.f32 1.0, %v105_v18 }
  0xb7   :  { %108 = vrcp.f32 %v59_v19 }
  0xc0   :  { %v107_v26 = vpop.eup %106 }
  0xc1   :  { %v71_v28 = vrot.slane %v107_v26, %v70_v24 }
  0xc4   :  { %v109_v27 = vpop.eup %108 }
  0xc5   :  { %v76_v29 = vrot.slane %v109_v27, %v75_v25 }
  0xc7   :  { %v78_v30 = vsel %vm77_vm1, %v76_v29, %v71_v28 }
  0xc8   :  { %81 = vst.msk [vmem:[#allocation6] sm:$0x1] %vm80_vm2, %v78_v30 }
  0xc9   :  { %141 = shalt.err (!%p138_p9)
}
  0xca   :  { %91 = dma.vmem_to_hbm [thread:$0]  %s89_s1, 16, %s193_s3, [#allocation5]  }
  0xcb   :  { %152 = dma.done.wait [#allocation5], 16  }
  0xcc   :  { %153 = vsyncadd [#allocation5], 4294967280 }
  0xcd   :  { %95 = vsyncpa [#allocation4], 1 }
  0xce   :  { %96 = vsyncpa [#allocation5], 1 }

</bundles_post_ra>
